<compile_context>
chip_gen: v7x
topology: tpu7x:2x2x1
jax: 0.10.0
libtpu: 0.0.40
codegen_flags: <defaults>
</compile_context>

<pallas_src>
import numpy as np
import jax
import jax.numpy as jnp
from jax import lax
from jax.experimental import pallas as pl
from jax.experimental.pallas import tpu as pltpu


def _cos_features_kernel(params_ref, w_ref, b_ref, x_ref, o_ref):
    """One (S, TN) output tile.

    params_ref : SMEM f32[2] = [1/exp(log_kernel_length), sqrt(2*exp(log_kernel_amp)/output_dim)]
    w_ref      : VMEM (S, D)  random-feature weights (full block, resident across grid)
    b_ref      : VMEM (S, 1)  random-feature phases  (full block, resident across grid)
    x_ref      : VMEM (TN, D) current tile of input rows
    o_ref      : VMEM (S, TN) lane-dense output tile (N on the 128-lane axis)
    """
    inv_length = params_ref[0]
    scale = params_ref[1]

    # Fold kernel-length scaling into the tiny (S, D) operand (S*D mults/step)
    # instead of the (TN, D) operand — mathematically identical.
    w_scaled = w_ref[...] * inv_length

    # (S, D) . (TN, D), contracting on D  ->  (S, TN).  No transpose of x is
    # materialized and the output lane axis is N (unmasked full-lane stores).
    # NOTE: on v5e/v6e a D=4 contraction barely uses the MXU; a rank-1 VPU
    # accumulation is a possible further tweak but the cos (EUP) dominates anyway.
    m = lax.dot_general(
        w_scaled, x_ref[...],
        dimension_numbers=(((1,), (1,)), ((), ())),
        preferred_element_type=jnp.float32)

    # b (S, 1) broadcasts over lanes: one VPU add + one VPU mul + EUP cos per step.
    o_ref[...] = scale * jnp.cos(m + b_ref[...])


def _plain_jax_forward(inputs, w, b, log_kernel_amp, log_kernel_length, output_dim):
    """Reference / small-problem path (XLA fuses this fine at toy sizes)."""
    x = inputs / jnp.exp(log_kernel_length)
    scale = jnp.sqrt(2.0 * jnp.exp(log_kernel_amp) / output_dim)
    return scale * jnp.cos(jnp.einsum("nd,sdo->sno", x, w) + b)


def _pick_tile_n(n_rows):
    # Lane axis of the (S, TN) output tile: must be a multiple of 128 or the full
    # extent.  512 rows keeps the double-buffered x tile (2*TN*D*4 B) plus the
    # (S, TN) output tile far below VMEM on every chip (incl. v7x's 64 MiB) while
    # making each DMA large enough to approach the HBM roofline.
    if n_rows <= 512:
        return n_rows
    return 512


def cos_functions_forward(inputs, w, b, log_kernel_amp, log_kernel_length,
                          output_dim, *, min_rows_for_pallas=256):
    """JAX/Pallas equivalent of CosFunctions.forward.

    inputs: (N, D) float32
    w:      (num_samples, D, 1) float32  (trailing dim must be 1, as in the torch module)
    b:      (num_samples, 1, 1) float32
    returns phi: (num_samples, N, 1) float32
    """
    N, D = inputs.shape
    S, Dw, trailing = w.shape
    if Dw != D or trailing != 1:
        raise ValueError(f"w must have shape (num_samples, {D}, 1); got {w.shape}")

    # Tiny problems are pure pallas_call launch overhead: let XLA fuse them.
    if N < min_rows_for_pallas:
        return _plain_jax_forward(inputs.astype(jnp.float32), w.astype(jnp.float32),
                                  b.astype(jnp.float32), log_kernel_amp,
                                  log_kernel_length, output_dim)

    # Scalars -> SMEM (applied in-kernel; no pre-scaling of operands in the wrapper).
    inv_length = jnp.exp(-log_kernel_length)
    scale = jnp.sqrt(2.0 * jnp.exp(log_kernel_amp) / output_dim)
    params = jnp.stack([inv_length, scale]).astype(jnp.float32)        # (2,)

    w_sd = w[:, :, 0].astype(jnp.float32)                              # (S, D)
    b_col = b[:, :, 0].astype(jnp.float32)                             # (S, 1)
    x = inputs.astype(jnp.float32)

    tn = _pick_tile_n(N)
    pad = (-N) % tn
    if pad:
        x = jnp.pad(x, ((0, pad), (0, 0)))
    n_pad = N + pad
    grid = (n_pad // tn,)

    cost = pl.CostEstimate(
        flops=2 * n_pad * D * S,
        transcendentals=n_pad * S,
        bytes_accessed=4 * (n_pad * D + S * D + S + S * n_pad),
    )

    out_sn = pl.pallas_call(
        _cos_features_kernel,
        out_shape=jax.ShapeDtypeStruct((S, n_pad), jnp.float32),
        grid=grid,
        in_specs=[
            pl.BlockSpec(memory_space=pltpu.MemorySpace.SMEM),         # params (scalars)
            pl.BlockSpec((S, D), lambda i: (0, 0)),                    # W  (full, resident)
            pl.BlockSpec((S, 1), lambda i: (0, 0)),                    # b  (full, resident)
            pl.BlockSpec((tn, D), lambda i: (i, 0)),                   # x row tile
        ],
        out_specs=pl.BlockSpec((S, tn), lambda i: (0, i)),             # lane-dense output
        compiler_params=pltpu.CompilerParams(
            dimension_semantics=("parallel",)),                        # megacore on v7x
        cost_estimate=cost,
    )(params, w_sd, b_col, x)

    if pad:
        out_sn = out_sn[:, :N]

    # PyTorch layout (num_samples, N, output_dim=1) — no transpose needed.
    return out_sn[:, :, None]


if __name__ == "__main__":
    # Module config consistent with CosFunctions: num_samples=8, input_dim=4, output_dim=1.
    num_samples = 8
    input_dim = 4
    output_dim = 1
    N = 1024          # large enough to take the tiled Pallas path (grid of 2 x 512-row tiles)

    key = jax.random.PRNGKey(0)
    k_x, k_w, k_u = jax.random.split(key, 3)

    inputs = jax.random.normal(k_x, (N, input_dim), dtype=jnp.float32)

    # "Learned" parameters (non-trivial values to exercise the math).
    log_kernel_amp = jnp.float32(np.log(1.5))
    log_kernel_length = jnp.float32(np.log(0.8))

    # Deterministic noise (GaussianSampler / UniformSampler equivalents).
    w = jax.random.normal(k_w, (num_samples, input_dim, 1), dtype=jnp.float32)
    b = (2.0 * np.pi) * jax.random.uniform(k_u, (num_samples, 1, 1), dtype=jnp.float32)

    phi = cos_functions_forward(inputs, w, b, log_kernel_amp, log_kernel_length, output_dim)
    phi = jax.block_until_ready(phi)

    # Pure-JAX reference for correctness.
    phi_ref = jax.block_until_ready(
        _plain_jax_forward(inputs, w, b, log_kernel_amp, log_kernel_length, output_dim))

    assert phi.shape == (num_samples, N, output_dim), phi.shape
    np.testing.assert_allclose(np.asarray(phi), np.asarray(phi_ref), rtol=1e-5, atol=1e-5)

    # Tiny-problem dispatch (bypasses Pallas; would be pure launch overhead otherwise).
    small = jax.block_until_ready(
        cos_functions_forward(inputs[:16], w, b, log_kernel_amp, log_kernel_length, output_dim))
    assert small.shape == (num_samples, 16, output_dim), small.shape
    np.testing.assert_allclose(np.asarray(small), np.asarray(phi_ref[:, :16]),
                               rtol=1e-5, atol=1e-5)

    print("KERNEL_OK")
</pallas_src>

<mosaic_0001>
module attributes {stable_mosaic.version = 11 : i64} {
  func.func @_cos_features_kernel(%arg0: i32, %arg1: memref<2xf32, #tpu.memory_space<smem>>, %arg2: memref<8x4xf32, #tpu.memory_space<vmem>>, %arg3: memref<8x1xf32, #tpu.memory_space<vmem>>, %arg4: memref<512x4xf32, #tpu.memory_space<vmem>>, %arg5: memref<8x512xf32, #tpu.memory_space<vmem>>) attributes {dimension_semantics = [#tpu.dimension_semantics<parallel>], iteration_bounds = array<i64: 2>, scalar_prefetch = 0 : i64, scratch_operands = 0 : i64, tpu.core_type = #tpu.core_type<tc>, window_params = [{transform_indices = @transform_0, window_bounds = array<i64: 2>}, {pipeline_mode = #tpu.pipeline_mode<synchronous>, transform_indices = @transform_1, window_bounds = array<i64: 8, 4>}, {pipeline_mode = #tpu.pipeline_mode<synchronous>, transform_indices = @transform_2, window_bounds = array<i64: 8, 1>}, {transform_indices = @transform_3, window_bounds = array<i64: 512, 4>}, {transform_indices = @transform_4, window_bounds = array<i64: 8, 512>}]} {
    %c0 = arith.constant 0 : index
    %0 = memref.load %arg1[%c0] : memref<2xf32, #tpu.memory_space<smem>>
    %c1 = arith.constant 1 : index
    %1 = memref.load %arg1[%c1] : memref<2xf32, #tpu.memory_space<smem>>
    %c0_0 = arith.constant 0 : index
    %c0_1 = arith.constant 0 : index
    %2 = vector.load %arg2[%c0_0, %c0_1] : memref<8x4xf32, #tpu.memory_space<vmem>>, vector<8x4xf32>
    %3 = vector.broadcast %0 : f32 to vector<8x4xf32>
    %4 = arith.mulf %2, %3 : vector<8x4xf32>
    %c0_2 = arith.constant 0 : index
    %c0_3 = arith.constant 0 : index
    %5 = vector.load %arg4[%c0_2, %c0_3] : memref<512x4xf32, #tpu.memory_space<vmem>>, vector<512x4xf32>
    %cst = arith.constant dense<0.000000e+00> : vector<8x512xf32>
    %6 = tpu.matmul %4, %5, %cst {dimension_numbers = #tpu.dot_dimension_numbers<[1], [1], [0], [0], [0, 0, 1, 0], [], []>} : vector<8x4xf32>, vector<512x4xf32>, vector<8x512xf32> -> vector<8x512xf32>
    %c0_4 = arith.constant 0 : index
    %c0_5 = arith.constant 0 : index
    %7 = vector.load %arg3[%c0_4, %c0_5] : memref<8x1xf32, #tpu.memory_space<vmem>>, vector<8x1xf32>
    %8 = vector.broadcast %7 : vector<8x1xf32> to vector<8x512xf32>
    %9 = arith.addf %6, %8 : vector<8x512xf32>
    %10 = math.cos %9 : vector<8x512xf32>
    %11 = vector.broadcast %1 : f32 to vector<8x512xf32>
    %12 = arith.mulf %11, %10 : vector<8x512xf32>
    %c0_6 = arith.constant 0 : index
    %c0_7 = arith.constant 0 : index
    %13 = vector.load %arg5[%c0_6, %c0_7] : memref<8x512xf32, #tpu.memory_space<vmem>>, vector<8x512xf32>
    tpu.vector_store %arg5[%c0_6, %c0_7], %12 {strides = array<i32>} : memref<8x512xf32, #tpu.memory_space<vmem>>, vector<8x512xf32>,
    return
  }
  func.func @transform_0(%arg0: i32) -> i32 {
    %c0_i32 = arith.constant 0 : i32
    %c0_i32_0 = arith.constant 0 : i32
    return %c0_i32 : i32
  }
  func.func @transform_1(%arg0: i32) -> (i32, i32) {
    %c0_i32 = arith.constant 0 : i32
    %c0_i32_0 = arith.constant 0 : i32
    %c0_i32_1 = arith.constant 0 : i32
    return %c0_i32, %c0_i32_0 : i32, i32
  }
  func.func @transform_2(%arg0: i32) -> (i32, i32) {
    %c0_i32 = arith.constant 0 : i32
    %c0_i32_0 = arith.constant 0 : i32
    %c0_i32_1 = arith.constant 0 : i32
    return %c0_i32, %c0_i32_0 : i32, i32
  }
  func.func @transform_3(%arg0: i32) -> (i32, i32) {
    %c0_i32 = arith.constant 0 : i32
    %c0_i32_0 = arith.constant 0 : i32
    return %arg0, %c0_i32 : i32, i32
  }
  func.func @transform_4(%arg0: i32) -> (i32, i32) {
    %c0_i32 = arith.constant 0 : i32
    %c0_i32_0 = arith.constant 0 : i32
    return %c0_i32, %arg0 : i32, i32
  }
}

</mosaic_0001>

<bundles_post_ra>
// kernel: tpu_custom_call.1
= control target key start
LH: loop header
LB: loop body
LE: loop exit
PB: predicated region body
PF: predicated region fallthrough
CT: control target
= control target key end

     0   :  { %9 = vsyncpa [#allocation4], 0  ;;  %s2187_s0 = inlined_call_operand.vmem [shape: f32[2], index: 0, kind: input, shape index: {}]   ;;  %s2188_s1 = inlined_call_operand.vmem [shape: f32[8,4], index: 1, kind: input, shape index: {}]   ;;  %s2189_s2 = inlined_call_operand.vmem [shape: f32[8,1], index: 2, kind: input, shape index: {}]   ;;  %s2190_s3 = inlined_call_operand.vmem [shape: f32[1024,4], index: 3, kind: input, shape index: {}]   ;;  %s2191_s4 = inlined_call_operand.hbm [shape: f32[8,1024], index: 4, kind: output, shape index: {}]  }
   0x1   :  { %10 = vsyncpa [#allocation3], 0 }
   0x2   :  { %12 = vsyncpa [#allocation3 + $0x1], 0  ;;  %s1602_s15 = smov 0   ;;  %s1604_s16 = smov 0  }
   0x3   :  { %s1606_s17 = smov 0   ;;  %s1608_s18 = smov 0  }
   0x4 LB: > { %s1623_s19 = sadd.s32 4294967295, %s1566_s18   ;;  %s1133_s20 = sadd.s32 4294967294, %s1566_s18   ;;  %s1566_s18 = sphi %s1608_s18, %s2204_s18   ;;  %s1562_s17 = sphi %s1606_s17, %s2203_s17   ;;  %s1558_s16 = sphi %s1604_s16, %s2202_s16   ;;  %s1554_s15 = sphi %s1602_s15, %s2201_s15  }
   0x5   : > { %s1627_s21 = sadd.s32 1, %s1566_s18   ;;  %s114_s22 = sadd.s32 1, %s1562_s17 }
   0x6   : > { %s111_s23 = ssub.s32 %s1566_s18, %s1627_s21  ;;  %p124_p0 = scmp.ne.s32.totalorder %s1562_s17, %s1558_s16 }
   0x7   : > { %p112_p1 = scmp.eq.s32.totalorder %s111_s23, 0  ;;  %p125_p2 = scmp.eq.s32.totalorder %s1623_s19, 1 }
   0x8   : > { %p130_p3 = scmp.ne.s32.totalorder %s1558_s16, %s1554_s15  ;;  %p131_p4 = scmp.eq.s32.totalorder %s1133_s20, 1 }
   0x9   : > { %s1638_s24 = scalar_select %p112_p1, %s1562_s17, %s114_s22  }
   0xa   : > { %p1640_p5 = por %p125_p2, %p124_p0  ;;  %p1644_p6 = por %p131_p4, %p130_p3 }
   0xb   : > { %p1134_p7 = scmp.ge.s32.totalorder %s1566_s18, 1  ;;  %p138_p8 = scmp.lt.s32.totalorder %s1566_s18, 3 }
   0xc   : > { %p1425_p9 = scmp.eq.s32.totalorder %s1623_s19, 0  ;;  %s151_s30 = sshll.u32 %s2187_s0, 4  ;;  %s152_s30 = int_to_ptr.vmem [resolvable:$true] %s151_s30 }
   0xd   : > { %p1651_p10 = pnand %p1134_p7, %p138_p8  ;;  %s1485_s5 = scalar_lea.vmem %s152_s30, 16 }
   0xe   : > { %p1486_p13 = scmp.ne.s32.totalorder %s152_s30, %s1485_s5  ;;  %p1493_p3 = scmp.lt.s32.totalorder %s152_s30, %s152_s30 }
   0xf   : > { %p1417_p11 = pneg %p1651_p10  ;;  %p1494_p4 = scmp.lt.s32.totalorder %s1485_s5, %s1485_s5 }
  0x11   : > { %p1418_p12 = pnand %p1425_p9, %p1417_p11  ;;  %p1495_p7 = por %p1494_p4, %p1493_p3 }
  0x13   : > { %p1487_p0 = pneg %p1418_p12 }
  0x15   : > { %p1488_p1 = pnand %p1487_p0, %p1486_p13 }
  0x17   : > { %p1489_p2 = pneg %p1488_p1 }
  0x19   : > { %p1496_p8 = pnand %p1495_p7, %p1489_p2 }
  0x1b   : > { %1499 = shalt.err (!%p1496_p8)
}
  0x1c   : > { %s1568_s6 = smov [#allocation2]   ;;  %179 = sbr.rel (%p1651_p10) target bundleno = 478 (0x1de), region = 36 }
  0x1d   : > { %1420 = dma.vmem_to_smem (!%p1418_p12), %s152_s30, 16, %s1568_s6, [#allocation4]  }
  0x23   : > { %1545 = dma.done.wait (%p1425_p9), [#allocation4], 16  }
  0x24   : > { %1547 = vsyncadd (%p1425_p9), [#allocation4], 4294967280 }
  0x25   : > { %185 = sfence }
  0x26   : > { %s1140_s7 = sshll.u32 %s1623_s19, 6  ;;  %s213_s8 = sld [smem:[#allocation2]]  ;;  %v1569_v0 = vmov 0   ;;  %v282_v1 = vld [vmem:[%s2189_s2] sm:$0xff]  ;;  %vm288_vm0 = vcmask 31744  }
  0x27   : > { %p207_p11 = scmp.lt.s32.totalorder %s1140_s7, 127  ;;  %1468 = vset.pattern.permute.xlu0 %v1569_v0  ;;  %v215_v2 = vld [vmem:[%s2188_s1] sm:$0xff]  ;;  %vm1682_vm1 = vmpackc.low %vm288_vm0, %vm288_vm0  ;;  %s2055_s23 = sld [smem:[#allocation2 + $0x1]] }
  0x28   : > { %285 = vperm.xlu0 %1468, %v282_v1   ;;  %s203_s27 = sand.u32 1, %s1558_s16   ;;  %s1230_s30 = sshll.u32 %s1623_s19, 9 }
  0x29   : > { %s2206_s7 = smov (!%p207_p11, %s1140_s7), 127  ;;  %s1139_s28 = sshll.u32 %s203_s27, 5 }
  0x2a   : > { %s1141_s13 = sshll.u32 %s2206_s7, 3  ;;  %s2114_s29 = scalar_lea.vmem [#allocation5], %s1139_s28 }
  0x2b   : > { %s1678_s22 = scalar_lea.vmem %s2190_s3, %s1141_s13  ;;  %s1062_s5 = sshll.u32 %s2114_s29, 4  ;;  %s2144_s5 = int_to_ptr.vmem [resolvable:$true] %s1062_s5 }
  0x2c   : > { %v216_v4 = vstv %s213_s8  ;;  %v234_v5 = vld [vmem:[%s1678_s22 + $0x80] sm:$0xff]  ;;  %v235_v6 = vld [vmem:[%s1678_s22 + $0x88] sm:$0xff]  ;;  %v236_v17 = vld [vmem:[%s1678_s22 + $0x90] sm:$0xff]  ;;  %s2142_s8 = scalar_lea.hbm %s2191_s4, %s1230_s30  ;;  %s1048_s19 = scalar_lea.sflag [#allocation3], %s203_s27 }
  0x2d   : > { %v266_v7 = vld [vmem:[%s1678_s22 + $0x180] sm:$0xff]  ;;  %v1689_v8 = vmul.f32 %v216_v4, %v215_v2  ;;  %v1299_v9 = vpack.c.bf16 %v235_v6, %v234_v5  ;;  %v267_v10 = vld [vmem:[%s1678_s22 + $0x188] sm:$0xff]  ;;  %v237_v19 = vld [vmem:[%s1678_s22 + $0x98] sm:$0xff]  ;;  %s1500_s9 = scalar_lea.vmem %s2144_s5, 512  ;;  %s1576_s10 = smov [#allocation5]  }
  0x2e   : > { %v218_v11 = vld [vmem:[%s1678_s22] sm:$0xff]  ;;  %v219_v12 = vld [vmem:[%s1678_s22 + $0x8] sm:$0xff]  ;;  %v1347_v13 = vpack.c.bf16 %v267_v10, %v266_v7  ;;  %v268_v20 = vld [vmem:[%s1678_s22 + $0x190] sm:$0xff]  ;;  %v1305_v22 = vpack.c.bf16 %v237_v19, %v236_v17  ;;  %p1501_p9 = scmp.ne.s32.totalorder %s2144_s5, %s1500_s9  ;;  %s1504_s11 = sshll.u32 %s1576_s10, 4  ;;  %s1505_s11 = int_to_ptr.vmem [resolvable:$false] %s1504_s11 }
  0x2f   : > { %v1302_v14 = vpack.c.bf16 %v219_v12, %v218_v11  ;;  %v250_v15 = vld [vmem:[%s1678_s22 + $0x100] sm:$0xff]  ;;  %v251_v16 = vld [vmem:[%s1678_s22 + $0x108] sm:$0xff]  ;;  %1263 = vmatprep.mubr.msk.f32.mxu0 %vm288_vm0, %v1689_v8  ;;  %1297 = vmatprep.mubr.msk.f32.mxu1 %vm288_vm0, %v1689_v8  ;;  %v269_v21 = vld [vmem:[%s1678_s22 + $0x198] sm:$0xff]  ;;  %s1506_s12 = scalar_lea.vmem %s1505_s11, 1024  ;;  %p1507_p13 = scmp.lt.s32.totalorder %s2144_s5, %s1505_s11 }
  0x30   : > { %1301 = vmatprep.subr.msk.bf16.mxu0 %vm1682_vm1, %v1299_v9  ;;  %v1350_v18 = vpack.c.bf16 %v251_v16, %v250_v15  ;;  %1349 = vmatprep.subr.msk.bf16.mxu1 %vm1682_vm1, %v1347_v13  ;;  %v1353_v23 = vpack.c.bf16 %v269_v21, %v268_v20  ;;  %v220_v24 = vld [vmem:[%s1678_s22 + $0x10] sm:$0xff]  ;;  %v221_v25 = vld [vmem:[%s1678_s22 + $0x18] sm:$0xff]  ;;  %v238_v28 = vld [vmem:[%s1678_s22 + $0xa0] sm:$0xff]  ;;  %p1502_p10 = pnand %p1501_p9, %p1640_p5  ;;  %p1508_p0 = scmp.lt.s32.totalorder %s1506_s12, %s1500_s9 }
  0x31   : > { %1304 = vmatpush3.bf16.xpose.msk.msra.mxu0 %vm1682_vm1, %v1302_v14  ;;  %v252_v26 = vld [vmem:[%s1678_s22 + $0x110] sm:$0xff]  ;;  %v253_v27 = vld [vmem:[%s1678_s22 + $0x118] sm:$0xff]  ;;  %v239_v29 = vld [vmem:[%s1678_s22 + $0xa8] sm:$0xff]  ;;  %v1308_v32 = vpack.c.bf16 %v221_v25, %v220_v24 }
  0x32   : > { %1352 = vmatpush3.bf16.xpose.msk.msra.mxu1 %vm1682_vm1, %v1350_v18  ;;  %1307 = vmatprep.subr.msk.bf16.mxu0 %vm1682_vm1, %v1305_v22  ;;  %v270_v30 = vld [vmem:[%s1678_s22 + $0x1a0] sm:$0xff]  ;;  %v271_v31 = vld [vmem:[%s1678_s22 + $0x1a8] sm:$0xff]  ;;  %v1356_v33 = vpack.c.bf16 %v253_v27, %v252_v26  ;;  %v1311_v34 = vpack.c.bf16 %v239_v29, %v238_v28  ;;  %v240_v40 = vld [vmem:[%s1678_s22 + $0xb0] sm:$0xff]  ;;  %p1503_p12 = pneg %p1502_p10  ;;  %p1509_p1 = por %p1508_p0, %p1507_p13 }
  0x33   : > { %1355 = vmatprep.subr.msk.bf16.mxu1 %vm1682_vm1, %v1353_v23  ;;  %v1359_v35 = vpack.c.bf16 %v271_v31, %v270_v30  ;;  %v222_v36 = vld [vmem:[%s1678_s22 + $0x20] sm:$0xff]  ;;  %v223_v37 = vld [vmem:[%s1678_s22 + $0x28] sm:$0xff]  ;;  %v241_v41 = vld [vmem:[%s1678_s22 + $0xb8] sm:$0xff] }
  0x34   : > { %v254_v38 = vld [vmem:[%s1678_s22 + $0x120] sm:$0xff]  ;;  %v255_v39 = vld [vmem:[%s1678_s22 + $0x128] sm:$0xff]  ;;  %v272_v42 = vld [vmem:[%s1678_s22 + $0x1b0] sm:$0xff]  ;;  %v1314_v44 = vpack.c.bf16 %v223_v37, %v222_v36  ;;  %v1317_v46 = vpack.c.bf16 %v241_v41, %v240_v40  ;;  %p1510_p2 = pnand %p1509_p1, %p1503_p12 }
  0x35   : > { %v273_v43 = vld [vmem:[%s1678_s22 + $0x1b8] sm:$0xff]  ;;  %v1362_v45 = vpack.c.bf16 %v255_v39, %v254_v38  ;;  %v224_v48 = vld [vmem:[%s1678_s22 + $0x30] sm:$0xff]  ;;  %v242_v52 = vld [vmem:[%s1678_s22 + $0xc0] sm:$0xff] }
  0x36   : > { %v1365_v47 = vpack.c.bf16 %v273_v43, %v272_v42  ;;  %v225_v49 = vld [vmem:[%s1678_s22 + $0x38] sm:$0xff]  ;;  %v256_v50 = vld [vmem:[%s1678_s22 + $0x130] sm:$0xff]  ;;  %v243_v53 = vld [vmem:[%s1678_s22 + $0xc8] sm:$0xff] }
  0x37   : > { %v257_v51 = vld [vmem:[%s1678_s22 + $0x138] sm:$0xff]  ;;  %v274_v54 = vld [vmem:[%s1678_s22 + $0x1c0] sm:$0xff]  ;;  %v275_v55 = vld [vmem:[%s1678_s22 + $0x1c8] sm:$0xff]  ;;  %v1320_v56 = vpack.c.bf16 %v225_v49, %v224_v48  ;;  %v1323_v58 = vpack.c.bf16 %v243_v53, %v242_v52 }
  0x38   : > { %v1368_v57 = vpack.c.bf16 %v257_v51, %v256_v50  ;;  %v1371_v59 = vpack.c.bf16 %v275_v55, %v274_v54  ;;  %v226_v60 = vld [vmem:[%s1678_s22 + $0x40] sm:$0xff]  ;;  %v227_v61 = vld [vmem:[%s1678_s22 + $0x48] sm:$0xff]  ;;  %v244_v0 = vld [vmem:[%s1678_s22 + $0xd0] sm:$0xff] }
  0x39   : > { %1310 = vmatpush3.bf16.xpose.msk.msra.mxu0 %vm1682_vm1, %v1308_v32  ;;  %v258_v62 = vld [vmem:[%s1678_s22 + $0x140] sm:$0xff]  ;;  %v259_v63 = vld [vmem:[%s1678_s22 + $0x148] sm:$0xff]  ;;  %v245_v1 = vld [vmem:[%s1678_s22 + $0xd8] sm:$0xff]  ;;  %v1326_v5 = vpack.c.bf16 %v227_v61, %v226_v60 }
  0x3a   : > { %1358 = vmatpush3.bf16.xpose.msk.msra.mxu1 %vm1682_vm1, %v1356_v33  ;;  %1313 = vmatprep.subr.msk.bf16.mxu0 %vm1682_vm1, %v1311_v34  ;;  %v276_v2 = vld [vmem:[%s1678_s22 + $0x1d0] sm:$0xff]  ;;  %v277_v4 = vld [vmem:[%s1678_s22 + $0x1d8] sm:$0xff]  ;;  %v1374_v6 = vpack.c.bf16 %v259_v63, %v258_v62  ;;  %v1329_v7 = vpack.c.bf16 %v245_v1, %v244_v0  ;;  %v246_v14 = vld [vmem:[%s1678_s22 + $0xe0] sm:$0xff] }
  0x3b   : > { %1361 = vmatprep.subr.msk.bf16.mxu1 %vm1682_vm1, %v1359_v35  ;;  %v1377_v9 = vpack.c.bf16 %v277_v4, %v276_v2  ;;  %v228_v10 = vld [vmem:[%s1678_s22 + $0x50] sm:$0xff]  ;;  %v229_v11 = vld [vmem:[%s1678_s22 + $0x58] sm:$0xff]  ;;  %v247_v15 = vld [vmem:[%s1678_s22 + $0xe8] sm:$0xff] }
  0x3c   : > { %v260_v12 = vld [vmem:[%s1678_s22 + $0x150] sm:$0xff]  ;;  %v261_v13 = vld [vmem:[%s1678_s22 + $0x158] sm:$0xff]  ;;  %v278_v16 = vld [vmem:[%s1678_s22 + $0x1e0] sm:$0xff]  ;;  %v1332_v18 = vpack.c.bf16 %v229_v11, %v228_v10  ;;  %v1335_v20 = vpack.c.bf16 %v247_v15, %v246_v14  ;;  %v1570_v10 = vmov 683565275  }
  0x3d   : > { %v279_v17 = vld [vmem:[%s1678_s22 + $0x1e8] sm:$0xff]  ;;  %v1380_v19 = vpack.c.bf16 %v261_v13, %v260_v12  ;;  %v230_v22 = vld [vmem:[%s1678_s22 + $0x60] sm:$0xff]  ;;  %v248_v26 = vld [vmem:[%s1678_s22 + $0xf0] sm:$0xff]  ;;  %v1571_v14 = vmov 2475754826  }
  0x3e   : > { %v1383_v21 = vpack.c.bf16 %v279_v17, %v278_v16  ;;  %v231_v23 = vld [vmem:[%s1678_s22 + $0x68] sm:$0xff]  ;;  %v262_v24 = vld [vmem:[%s1678_s22 + $0x160] sm:$0xff]  ;;  %v249_v27 = vld [vmem:[%s1678_s22 + $0xf8] sm:$0xff]  ;;  %v1572_v16 = vmov 2131351028  }
  0x3f   : > { %v263_v25 = vld [vmem:[%s1678_s22 + $0x168] sm:$0xff]  ;;  %v280_v28 = vld [vmem:[%s1678_s22 + $0x1f0] sm:$0xff]  ;;  %v281_v29 = vld [vmem:[%s1678_s22 + $0x1f8] sm:$0xff]  ;;  %v1338_v30 = vpack.c.bf16 %v231_v23, %v230_v22  ;;  %v1341_v32 = vpack.c.bf16 %v249_v27, %v248_v26  ;;  %v1575_v27 = vmov 1326507024  }
  0x40   : > { %v1386_v31 = vpack.c.bf16 %v263_v25, %v262_v24  ;;  %v1389_v33 = vpack.c.bf16 %v281_v29, %v280_v28  ;;  %v232_v34 = vld [vmem:[%s1678_s22 + $0x70] sm:$0xff]  ;;  %v233_v35 = vld [vmem:[%s1678_s22 + $0x78] sm:$0xff] }
  0x41   : > { %1316 = vmatpush3.bf16.xpose.msk.msra.mxu0 %vm1682_vm1, %v1314_v44  ;;  %v264_v36 = vld [vmem:[%s1678_s22 + $0x170] sm:$0xff]  ;;  %v265_v37 = vld [vmem:[%s1678_s22 + $0x178] sm:$0xff]  ;;  %v1344_v38 = vpack.c.bf16 %v233_v35, %v232_v34 }
  0x42   : > { %1364 = vmatpush3.bf16.xpose.msk.msra.mxu1 %vm1682_vm1, %v1362_v45  ;;  %1319 = vmatprep.subr.msk.bf16.mxu0 %vm1682_vm1, %v1317_v46  ;;  %v1392_v39 = vpack.c.bf16 %v265_v37, %v264_v36 }
  0x43   : > { %1367 = vmatprep.subr.msk.bf16.mxu1 %vm1682_vm1, %v1365_v47 }
  0x49   : > { %1322 = vmatpush3.bf16.xpose.msk.msra.mxu0 %vm1682_vm1, %v1320_v56 }
  0x4a   : > { %1370 = vmatpush3.bf16.xpose.msk.msra.mxu1 %vm1682_vm1, %v1368_v57  ;;  %1325 = vmatprep.subr.msk.bf16.mxu0 %vm1682_vm1, %v1323_v58 }
  0x4b   : > { %1373 = vmatprep.subr.msk.bf16.mxu1 %vm1682_vm1, %v1371_v59 }
  0x51   : > { %1328 = vmatpush3.bf16.xpose.msk.msra.mxu0 %vm1682_vm1, %v1326_v5 }
  0x52   : > { %1376 = vmatpush3.bf16.xpose.msk.msra.mxu1 %vm1682_vm1, %v1374_v6  ;;  %1331 = vmatprep.subr.msk.bf16.mxu0 %vm1682_vm1, %v1329_v7 }
  0x53   : > { %1379 = vmatprep.subr.msk.bf16.mxu1 %vm1682_vm1, %v1377_v9 }
  0x59   : > { %1334 = vmatpush3.bf16.xpose.msk.msra.mxu0 %vm1682_vm1, %v1332_v18  ;;  %v1573_v18 = vmov 2102212464  }
  0x5a   : > { %1382 = vmatpush3.bf16.xpose.msk.msra.mxu1 %vm1682_vm1, %v1380_v19  ;;  %1337 = vmatprep.subr.msk.bf16.mxu0 %vm1682_vm1, %v1335_v20  ;;  %v1574_v20 = vmov 920167782  }
  0x5b   : > { %1385 = vmatprep.subr.msk.bf16.mxu1 %vm1682_vm1, %v1383_v21 }
  0x61   : > { %1340 = vmatpush3.bf16.xpose.msk.msra.mxu0 %vm1682_vm1, %v1338_v30 }
  0x62   : > { %1388 = vmatpush3.bf16.xpose.msk.msra.mxu1 %vm1682_vm1, %v1386_v31  ;;  %1343 = vmatprep.subr.msk.bf16.mxu0 %vm1682_vm1, %v1341_v32 }
  0x63   : > { %1391 = vmatprep.subr.msk.bf16.mxu1 %vm1682_vm1, %v1389_v33 }
  0x69   : > { %1346 = vmatpush3.bf16.xpose.msk.msra.mxu0 %vm1682_vm1, %v1344_v38 }
  0x6a   : > { %1394 = vmatpush3.bf16.xpose.msk.msra.mxu1 %vm1682_vm1, %v1392_v39 }
  0x70   : > { %1264 = vmatmul.mubr.msk.f32.vlgmr.msra.gmra.mrb[0].mxu0 %vm288_vm0, %v1689_v8 }
  0x71   : > { %1298 = vmatmul.mubr.msk.f32.vlgmr.msra.gmra.mrb[0].mxu1 %vm288_vm0, %v1689_v8 }
  0xa7   : > { %v1824_v40 = vpop.permute.xlu0 %285 }
 0x143   : > { %v550_v41 = vpop.f32.mrb[0].mxu0 }
 0x144   : > { %v1827_v42 = vadd.f32 %v550_v41, %v1824_v40  ;;  %v621_v43 = vpop.f32.mrb[0].mxu1  ;;  %v552_v44 = vpop.f32.mrb[1].mxu0 }
 0x145   : > { %v1830_v45 = vadd.f32 %v621_v43, %v1824_v40  ;;  %v1833_v3 = vadd.f32 %v552_v44, %v1824_v40  ;;  %v1835_v46 = vpop.f32.mrb[1].mxu1 }
 0x146   : > { %v626_v47 = vand.u32 2147483647, %v1827_v42  ;;  %v629_v8 = vand.u32 2139095040, %v1827_v42  ;;  %vm628_vm1 = vcmp.lt.s32.totalorder %v1827_v42, 0 }
 0x147   : > { %v832_v48 = vand.u32 2147483647, %v1830_v45  ;;  %v835_v49 = vand.u32 2139095040, %v1830_v45  ;;  %v732_v54 = vand.u32 2139095040, %v1833_v3  ;;  %v729_v6 = vand.u32 2147483647, %v1833_v3 }
 0x148   : > { %v630_v50 = vshrl.u32 %v629_v8, 23  ;;  %v633_v51 = vand.u32 8388607, %v626_v47 }
 0x149   : > { %v836_v52 = vshrl.u32 %v835_v49, 23  ;;  %v839_v53 = vand.u32 8388607, %v832_v48  ;;  %v733_v57 = vshrl.u32 %v732_v54, 23 }
 0x14a   : > { %v1209_v55 = vadd.s32 4294967169, %v630_v50  ;;  %v634_v59 = vor.u32 8388608, %v633_v51 }
 0x14b   : > { %v1217_v56 = vadd.s32 4294967169, %v836_v52  ;;  %v840_v60 = vor.u32 8388608, %v839_v53  ;;  %v1213_v62 = vadd.s32 4294967169, %v733_v57 }
 0x14c   : > { %v636_v58 = vadd.s32 1, %v1209_v55  ;;  %v1846_v4 = vshll.u32 %v634_v59, 8 }
 0x14d   : > { %v842_v61 = vadd.s32 1, %v1217_v56  ;;  %v1848_v5 = vshll.u32 %v840_v60, 8  ;;  %v1851_v7 = vadd.s32 1, %v1213_v62 }
 0x14e   : > { %vm637_vm2 = vcmp.gt.s32.totalorder %v636_v58, 0 }
 0x14f   : > { %v638_v63 = vsel %vm637_vm2, %v636_v58, 0  ;;  %vm843_vm3 = vcmp.gt.s32.totalorder %v842_v61, 0  ;;  %vm740_vm8 = vcmp.gt.s32.totalorder %v1851_v7, 0 }
 0x150   : > { %v639_v0 = vshrl.u32 %v638_v63, 5  ;;  %v640_v1 = vand.u32 31, %v638_v63  ;;  %v844_v2 = vsel %vm843_vm3, %v842_v61, 0 }
 0x151   : > { %v1854_v12 = vshrl.u32 %v844_v2, 5  ;;  %v846_v13 = vand.u32 31, %v844_v2 }
 0x152   : > { %v641_v9 = vsub.s32 32, %v640_v1  ;;  %v643_v11 = vshll.u32 %v1570_v10, %v640_v1  ;;  %v646_v15 = vshll.u32 %v1571_v14, %v640_v1  ;;  %v649_v17 = vshll.u32 %v1572_v16, %v640_v1 }
 0x153   : > { %v652_v19 = vshll.u32 %v1573_v18, %v640_v1  ;;  %v655_v21 = vshll.u32 %v1574_v20, %v640_v1  ;;  %vm658_vm4 = vcmp.lt.s32.totalorder %v639_v0, 1  ;;  %vm659_vm5 = vcmp.lt.s32.totalorder %v639_v0, 2 }
 0x154   : > { %v644_v22 = vshrl.u32 %v1571_v14, %v641_v9  ;;  %v647_v23 = vshrl.u32 %v1572_v16, %v641_v9  ;;  %v650_v24 = vshrl.u32 %v1573_v18, %v641_v9  ;;  %v642_v25 = vshrl.u32 %v1570_v10, %v641_v9 }
 0x155   : > { %v653_v26 = vshrl.u32 %v1574_v20, %v641_v9  ;;  %v656_v28 = vshrl.u32 %v1575_v27, %v641_v9  ;;  %v847_v32 = vsub.s32 32, %v846_v13  ;;  %vm660_vm6 = vcmp.lt.s32.totalorder %v639_v0, 3 }
 0x156   : > { %v645_v29 = vor.u32 %v644_v22, %v643_v11  ;;  %v648_v30 = vor.u32 %v647_v23, %v646_v15  ;;  %v651_v31 = vor.u32 %v650_v24, %v649_v17  ;;  %vm661_vm7 = vcmp.lt.s32.totalorder %v639_v0, 4 }
 0x157   : > { %v654_v33 = vor.u32 %v653_v26, %v652_v19  ;;  %v657_v34 = vor.u32 %v656_v28, %v655_v21  ;;  %v849_v44 = vshll.u32 %v1570_v10, %v846_v13  ;;  %v850_v50 = vshrl.u32 %v1571_v14, %v847_v32 }
 0x158   : > { %v662_v35 = vsel %vm658_vm4, %v642_v25, %v645_v29  ;;  %v663_v36 = vsel %vm661_vm7, %v651_v31, 2102212464  ;;  %v666_v37 = vsel %vm658_vm4, %v645_v29, %v648_v30  ;;  %v670_v38 = vsel %vm658_vm4, %v648_v30, %v651_v31 }
 0x159   : > { %v664_v39 = vsel %vm660_vm6, %v648_v30, %v663_v36  ;;  %v667_v41 = vsel %vm661_vm7, %v654_v33, 920167782  ;;  %v671_v43 = vsel %vm661_vm7, %v657_v34, 1326507024  ;;  %v852_v51 = vshll.u32 %v1571_v14, %v846_v13 }
 0x15a   : > { %v668_v8 = vsel %vm660_vm6, %v651_v31, %v667_v41  ;;  %v672_v49 = vsel %vm660_vm6, %v654_v33, %v671_v43  ;;  %v665_v52 = vsel %vm659_vm5, %v662_v35, %v664_v39  ;;  %v853_v55 = vshrl.u32 %v1572_v16, %v847_v32 }
 0x15b   : > { %v669_v53 = vsel %vm659_vm5, %v666_v37, %v668_v8  ;;  %v673_v54 = vsel %vm659_vm5, %v670_v38, %v672_v49  ;;  %v851_v60 = vor.u32 %v850_v50, %v849_v44  ;;  %v855_v62 = vshll.u32 %v1572_v16, %v846_v13 }
 0x15c   : > { %v1878_v56 = vmul.u32.u64.low %v1846_v4, %v673_v54  ;;  %v1879_v57 = vmul.u32.u64.high %v1846_v4, %v673_v54, %v1878_v56  ;;  %v1882_v58 = vmul.u32.u64.low %v1846_v4, %v669_v53  ;;  %v1883_v59 = vmul.u32.u64.high %v1846_v4, %v669_v53, %v1882_v58 }
 0x15d   : > { %v854_v61 = vor.u32 %v853_v55, %v852_v51  ;;  %v856_v63 = vshrl.u32 %v1573_v18, %v847_v32  ;;  %v848_v0 = vshrl.u32 %v1570_v10, %v847_v32  ;;  %v858_v1 = vshll.u32 %v1573_v18, %v846_v13 }
 0x15e   : > { %v859_v2 = vshrl.u32 %v1574_v20, %v847_v32  ;;  %v862_v9 = vshrl.u32 %v1575_v27, %v847_v32  ;;  %v681_v11 = vmul.u32 %v1846_v4, %v665_v52  ;;  %v861_v17 = vshll.u32 %v1574_v20, %v846_v13 }
 0x15f   : > { %v857_v15 = vor.u32 %v856_v63, %v855_v62  ;;  %vm864_vm9 = vcmp.lt.s32.totalorder %v1854_v12, 1  ;;  %vm683_vm10 = vc.u32 %v1879_v57, %v1882_v58  ;;  %v684_v19 = vadd.s32 1, %v1883_v59 }
 0x160   : > { %v860_v21 = vor.u32 %v859_v2, %v858_v1  ;;  %vm865_vm11 = vcmp.lt.s32.totalorder %v1854_v12, 2  ;;  %v863_v22 = vor.u32 %v862_v9, %v861_v17  ;;  %vm866_vm12 = vcmp.lt.s32.totalorder %v1854_v12, 3 }
 0x161   : > { %vm867_vm13 = vcmp.lt.s32.totalorder %v1854_v12, 4  ;;  %v872_v23 = vsel %vm864_vm9, %v851_v60, %v854_v61  ;;  %v685_v4 = vsel %vm683_vm10, %v684_v19, %v1883_v59  ;;  %v876_v25 = vsel %vm864_vm9, %v854_v61, %v857_v15 }
 0x162   : > { %v869_v24 = vsel %vm867_vm13, %v857_v15, 2102212464  ;;  %v873_v13 = vsel %vm867_vm13, %v860_v21, 920167782  ;;  %v686_v26 = vadd.s32 %v685_v4, %v681_v11  ;;  %v868_v28 = vsel %vm864_vm9, %v848_v0, %v851_v60 }
 0x163   : > { %v874_v29 = vsel %vm866_vm12, %v857_v15, %v873_v13  ;;  %v877_v30 = vsel %vm867_vm13, %v863_v22, 1326507024  ;;  %v870_v31 = vsel %vm866_vm12, %v854_v61, %v869_v24  ;;  %v741_v34 = vsel %vm740_vm8, %v1851_v7, 0 }
 0x164   : > { %v875_v32 = vsel %vm865_vm11, %v872_v23, %v874_v29  ;;  %v878_v33 = vsel %vm866_vm12, %v860_v21, %v877_v30  ;;  %v687_v35 = vadd.s32 536870912, %v686_v26  ;;  %v736_v43 = vand.u32 8388607, %v729_v6 }
 0x165   : > { %v879_v36 = vsel %vm865_vm11, %v876_v25, %v878_v33  ;;  %v1910_v37 = vmul.u32.u64.low %v1848_v5, %v875_v32  ;;  %v1911_v38 = vmul.u32.u64.high %v1848_v5, %v875_v32, %v1910_v37  ;;  %v1922_v44 = vadd.f32 %v1835_v46, %v1824_v40 }
 0x166   : > { %v1915_v39 = vmul.u32.u64.low %v1848_v5, %v879_v36  ;;  %v1916_v41 = vmul.u32.u64.high %v1848_v5, %v879_v36, %v1915_v39  ;;  %v1924_v7 = vshrl.u32 %v687_v35, 30  ;;  %v871_v8 = vsel %vm865_vm11, %v868_v28, %v870_v31 }
 0x167   : > { %v743_v49 = vand.u32 31, %v741_v34  ;;  %v890_v51 = vadd.s32 1, %v1911_v38  ;;  %v887_v53 = vmul.u32 %v1848_v5, %v871_v8  ;;  %v737_v54 = vor.u32 8388608, %v736_v43 }
 0x168   : > { %v689_v50 = vshll.u32 %v1924_v7, 30  ;;  %vm889_vm14 = vc.u32 %v1916_v41, %v1910_v37  ;;  %v938_v40 = vand.u32 2139095040, %v1922_v44  ;;  %v742_v9 = vshrl.u32 %v741_v34, 5 }
 0x169   : > { %v744_v52 = vsub.s32 32, %v743_v49  ;;  %v891_v55 = vsel %vm889_vm14, %v890_v51, %v1911_v38  ;;  %v746_v61 = vshll.u32 %v1570_v10, %v743_v49  ;;  %v749_v63 = vshll.u32 %v1571_v14, %v743_v49 }
 0x16a   : > { %v1934_v46 = vsub.s32 %v686_v26, %v689_v50  ;;  %v892_v12 = vadd.s32 %v891_v55, %v887_v53  ;;  %v1943_v0 = vshll.u32 %v737_v54, 8  ;;  %v939_v1 = vshrl.u32 %v938_v40, 23 }
 0x16b   : > { %v747_v56 = vshrl.u32 %v1571_v14, %v744_v52  ;;  %v750_v59 = vshrl.u32 %v1572_v16, %v744_v52  ;;  %v753_v5 = vshrl.u32 %v1573_v18, %v744_v52  ;;  %v752_v15 = vshll.u32 %v1572_v16, %v743_v49 }
 0x16c   : > { %v692_v60 = vsub.s32 0, %v1934_v46  ;;  %v893_v62 = vadd.s32 536870912, %v892_v12  ;;  %v755_v21 = vshll.u32 %v1573_v18, %v743_v49  ;;  %v756_v22 = vshrl.u32 %v1574_v20, %v744_v52 }
 0x16d   : > { %v748_v11 = vor.u32 %v747_v56, %v746_v61  ;;  %v751_v19 = vor.u32 %v750_v59, %v749_v63  ;;  %v754_v4 = vor.u32 %v753_v5, %v752_v15  ;;  %v758_v24 = vshll.u32 %v1574_v20, %v743_v49 }
 0x16e   : > { %v1210_v2 = vmin.u32 %v692_v60, %v1934_v46  ;;  %v1947_v17 = vshrl.u32 %v893_v62, 30  ;;  %v759_v13 = vshrl.u32 %v1575_v27, %v744_v52  ;;  %v682_v25 = vadd.s32 %v1882_v58, %v1879_v57 }
 0x16f   : > { %v757_v28 = vor.u32 %v756_v22, %v755_v21  ;;  %v1221_v29 = vadd.s32 4294967169, %v939_v1  ;;  %vm761_vm15 = vcmp.lt.s32.totalorder %v742_v9, 1  ;;  %vm764_vm0 = vcmp.lt.s32.totalorder %v742_v9, 4 }
 0x170   : > { %v694_v23 = vclz %v1210_v2  ;;  %v895_v26 = vshll.u32 %v1947_v17, 30  ;;  %v760_v31 = vor.u32 %v759_v13, %v758_v24  ;;  %vm762_vm2 = vcmp.lt.s32.totalorder %v742_v9, 2 }
 0x171   : > { %vm763_vm3 = vcmp.lt.s32.totalorder %v742_v9, 3  ;;  %v770_v33 = vsel %vm764_vm0, %v757_v28, 920167782  ;;  %v769_v34 = vsel %vm761_vm15, %v748_v11, %v751_v19  ;;  %v745_v38 = vshrl.u32 %v1570_v10, %v744_v52 }
 0x172   : > { %v1211_v30 = vadd.s32 4294967294, %v694_v23  ;;  %v1957_v32 = vsub.s32 %v892_v12, %v895_v26  ;;  %v771_v57 = vsel %vm763_vm3, %v754_v4, %v770_v33  ;;  %v774_v58 = vsel %vm764_vm0, %v760_v31, 1326507024 }
 0x173   : > { %v773_v39 = vsel %vm761_vm15, %v751_v19, %v754_v4  ;;  %vm1968_vm5 = vcmp.le.f32.partialorder %v626_v47, 0.7853982  ;;  %v766_v50 = vsel %vm764_vm0, %v754_v4, 2102212464  ;;  %v775_v51 = vsel %vm763_vm3, %v757_v28, %v774_v58 }
 0x174   : > { %vm1212_vm4 = vcmp.lt.s32.totalorder %v1211_v30, 0  ;;  %v898_v36 = vsub.s32 0, %v1957_v32  ;;  %v712_v53 = vsub.s32 4, %v1924_v7  ;;  %vm834_vm6 = vcmp.lt.s32.totalorder %v1830_v45, 0 }
 0x175   : > { %v697_v35 = vsel %vm1212_vm4, 0, %v1211_v30  ;;  %v765_v54 = vsel %vm761_vm15, %v745_v38, %v748_v11  ;;  %v772_v40 = vsel %vm762_vm2, %v769_v34, %v771_v57  ;;  %v776_v56 = vsel %vm762_vm2, %v773_v39, %v775_v51 }
 0x176   : > { %v698_v8 = vsub.s32 32, %v697_v35  ;;  %v702_v49 = vsub.s32 4294967266, %v697_v35  ;;  %v1218_v52 = vmin.u32 %v898_v36, %v1957_v32  ;;  %v699_v47 = vshll.u32 %v1934_v46, %v697_v35 }
 0x177   : > { %v767_v60 = vsel %vm763_vm3, %v751_v19, %v766_v50  ;;  %v1983_v61 = vmul.u32.u64.low %v1943_v0, %v776_v56  ;;  %v1984_v5 = vmul.u32.u64.high %v1943_v0, %v776_v56, %v1983_v61  ;;  %v888_v46 = vadd.s32 %v1910_v37, %v1916_v41 }
 0x178   : > { %v700_v55 = vshrl.u32 %v682_v25, %v698_v8  ;;  %v703_v12 = vadd.s32 127, %v702_v49  ;;  %v900_v59 = vclz %v1218_v52  ;;  %v935_v15 = vand.u32 2147483647, %v1922_v44 }
 0x179   : > { %v1987_v1 = vmul.u32.u64.low %v1943_v0, %v772_v40  ;;  %v1988_v2 = vmul.u32.u64.high %v1943_v0, %v772_v40, %v1987_v1  ;;  %v945_v21 = vadd.s32 1, %v1221_v29  ;;  %v713_v19 = vsel %vm628_vm1, %v712_v53, %v1924_v7 }
 0x17a   : > { %v701_v62 = vor.u32 %v700_v55, %v699_v47  ;;  %v704_v63 = vshll.u32 %v703_v12, 23  ;;  %v1219_v11 = vadd.s32 4294967294, %v900_v59  ;;  %v918_v23 = vsub.s32 4, %v1947_v17 }
 0x17b   : > { %v768_v4 = vsel %vm762_vm2, %v765_v54, %v767_v60  ;;  %vm786_vm8 = vc.u32 %v1984_v5, %v1987_v1  ;;  %vm946_vm9 = vcmp.gt.s32.totalorder %v945_v21, 0  ;;  %v787_v13 = vadd.s32 1, %v1988_v2 }
 0x17c   : > { %v705_v22 = vor.u32 4788187, %v704_v63  ;;  %v708_v24 = vcvt.s32.f32 %v701_v62  ;;  %vm1220_vm7 = vcmp.lt.s32.totalorder %v1219_v11, 0  ;;  %v947_v25 = vsel %vm946_vm9, %v945_v21, 0 }
 0x17d   : > { %v903_v41 = vsel %vm1220_vm7, 0, %v1219_v11  ;;  %v715_v26 = vsel %vm1968_vm5, 0, %v713_v19  ;;  %v784_v29 = vmul.u32 %v1943_v0, %v768_v4  ;;  %v2008_v30 = vsel %vm834_vm6, %v918_v23, %v1947_v17 }
 0x17e   : > { %v706_v37 = vand.u32 2147483647, %v705_v22  ;;  %v904_v28 = vsub.s32 32, %v903_v41  ;;  %v908_v7 = vsub.s32 4294967266, %v903_v41  ;;  %v788_v31 = vsel %vm786_vm8, %v787_v13, %v1988_v2 }
 0x17f   : > { %v949_v33 = vand.u32 31, %v947_v25  ;;  %v905_v34 = vshll.u32 %v1957_v32, %v903_v41  ;;  %v789_v35 = vadd.s32 %v788_v31, %v784_v29  ;;  %vm2014_vm10 = vcmp.le.f32.partialorder %v832_v48, 0.7853982 }
 0x180   : > { %v709_v9 = vmul.f32 %v708_v24, %v706_v37  ;;  %v906_v57 = vshrl.u32 %v888_v46, %v904_v28  ;;  %v909_v58 = vadd.s32 127, %v908_v7  ;;  %v942_v0 = vand.u32 8388607, %v935_v15 }
 0x181   : > { %v950_v17 = vsub.s32 32, %v949_v33  ;;  %v2020_v39 = vand.u32 3, %v715_v26  ;;  %v790_v50 = vadd.s32 536870912, %v789_v35  ;;  %v921_v51 = vsel %vm2014_vm10, 0, %v2008_v30 }
 0x182   : > { %v710_v36 = vxor.u32 2147483648, %v709_v9  ;;  %v907_v8 = vor.u32 %v906_v57, %v905_v34  ;;  %v910_v49 = vshll.u32 %v909_v58, 23  ;;  %v2027_v48 = vshrl.u32 %v947_v25, 5 }
 0x183   : > { %v953_v53 = vshrl.u32 %v1571_v14, %v950_v17  ;;  %v2033_v40 = vshrl.u32 %v790_v50, 30  ;;  %v956_v47 = vshrl.u32 %v1572_v16, %v950_v17  ;;  %v952_v55 = vshll.u32 %v1570_v10, %v949_v33 }
 0x184   : > { %v711_v32 = vsel %vm628_vm1, %v710_v36, %v709_v9  ;;  %v911_v54 = vor.u32 4788187, %v910_v49  ;;  %v955_v12 = vshll.u32 %v1571_v14, %v949_v33  ;;  %v959_v56 = vshrl.u32 %v1573_v18, %v950_v17 }
 0x185   : > { %v714_v52 = vsel %vm1968_vm5, %v1827_v42, %v711_v32  ;;  %v914_v60 = vcvt.s32.f32 %v907_v8  ;;  %v792_v61 = vshll.u32 %v2033_v40, 30  ;;  %v954_v62 = vor.u32 %v953_v53, %v952_v55 }
 0x186   : > { %1469 = vcosq.f32 %v714_v52  ;;  %v912_v59 = vand.u32 2147483647, %v911_v54  ;;  %v958_v43 = vshll.u32 %v1572_v16, %v949_v33  ;;  %v961_v63 = vshll.u32 %v1573_v18, %v949_v33 }
 0x187   : > { %1471 = vsinq.f32 %v714_v52  ;;  %v962_v2 = vshrl.u32 %v1574_v20, %v950_v17  ;;  %v2043_v11 = vsub.s32 %v789_v35, %v792_v61  ;;  %v957_v21 = vor.u32 %v956_v47, %v955_v12 }
 0x188   : > { %v915_v46 = vmul.f32 %v914_v60, %v912_v59  ;;  %v965_v14 = vshrl.u32 %v1575_v27, %v950_v17  ;;  %vm724_vm11 = vcmp.eq.s32.totalorder %v2020_v39, 2  ;;  %v943_v22 = vor.u32 8388608, %v942_v0 }
 0x189   : > { %v960_v19 = vor.u32 %v959_v56, %v958_v43  ;;  %v963_v23 = vor.u32 %v962_v2, %v961_v63  ;;  %v964_v4 = vshll.u32 %v1574_v20, %v949_v33  ;;  %vm721_vm12 = vcmp.eq.s32.totalorder %v2020_v39, 0 }
 0x18a   : > { %v916_v16 = vxor.u32 2147483648, %v915_v46  ;;  %v795_v18 = vsub.s32 0, %v2043_v11  ;;  %v951_v24 = vshrl.u32 %v1570_v10, %v950_v17  ;;  %vm967_vm13 = vcmp.lt.s32.totalorder %v2027_v48, 1 }
 0x18b   : > { %v966_v37 = vor.u32 %v965_v14, %v964_v4  ;;  %vm968_vm14 = vcmp.lt.s32.totalorder %v2027_v48, 2  ;;  %vm969_vm15 = vcmp.lt.s32.totalorder %v2027_v48, 3  ;;  %vm970_vm0 = vcmp.lt.s32.totalorder %v2027_v48, 4 }
 0x18c   : > { %vm718_vm1 = vweird.f32 %v1827_v42  ;;  %v917_v20 = vsel %vm834_vm6, %v916_v16, %v915_v46  ;;  %v1214_v27 = vmin.u32 %v795_v18, %v2043_v11  ;;  %v971_v41 = vsel %vm967_vm13, %v951_v24, %v954_v62 }
 0x18d   : > { %v975_v10 = vsel %vm967_vm13, %v954_v62, %v957_v21  ;;  %v920_v13 = vsel %vm2014_vm10, %v1830_v45, %v917_v20  ;;  %v972_v25 = vsel %vm970_vm0, %v960_v19, 2102212464  ;;  %v976_v26 = vsel %vm970_vm0, %v963_v23, 920167782 }
 0x18e   : > { %v979_v28 = vsel %vm967_vm13, %v957_v21, %v960_v19  ;;  %1473 = vcosq.f32 %v920_v13  ;;  %v797_v7 = vclz %v1214_v27  ;;  %v973_v29 = vsel %vm969_vm15, %v957_v21, %v972_v25 }
 0x18f   : > { %v977_v9 = vsel %vm969_vm15, %v960_v19, %v976_v26  ;;  %1475 = vsinq.f32 %v920_v13  ;;  %v980_v34 = vsel %vm970_vm0, %v966_v37, 1326507024  ;;  %v983_v57 = vshll.u32 %v943_v22, 8 }
 0x190   : > { %v1470_v31 = vpop.eup %1469  ;;  %v978_v33 = vsel %vm968_vm14, %v975_v10, %v977_v9  ;;  %v1215_v36 = vadd.s32 4294967294, %v797_v7  ;;  %v974_v0 = vsel %vm968_vm14, %v971_v41, %v973_v29  ;;  %v981_v17 = vsel %vm969_vm15, %v963_v23, %v980_v34 }
 0x191   : > { %v1472_v58 = vpop.eup %1471  ;;  %v725_v35 = vxor.u32 2147483648, %v1470_v31  ;;  %v982_v49 = vsel %vm968_vm14, %v979_v28, %v981_v17  ;;  %v2083_v50 = vmul.u32.u64.low %v983_v57, %v978_v33  ;;  %v2084_v32 = vmul.u32.u64.high %v983_v57, %v978_v33, %v2083_v50 }
 0x192   : > { %v722_v8 = vxor.u32 2147483648, %v1472_v58  ;;  %vm1216_vm2 = vcmp.lt.s32.totalorder %v1215_v36, 0  ;;  %v2089_v52 = vmul.u32.u64.low %v983_v57, %v982_v49  ;;  %v2090_v54 = vmul.u32.u64.high %v983_v57, %v982_v49, %v2089_v52 }
 0x193   : > { %v726_v53 = vsel %vm724_vm11, %v725_v35, %v1472_v58  ;;  %vm720_vm3 = vcmp.lt.s32.totalorder %v2020_v39, 2  ;;  %v800_v55 = vsel %vm1216_vm2, 0, %v1215_v36  ;;  %v2098_v48 = vstv %s2055_s23 }
 0x194   : > { %v723_v47 = vsel %vm721_vm12, %v1470_v31, %v722_v8  ;;  %v785_v56 = vadd.s32 %v1987_v1, %v1984_v5  ;;  %v801_v59 = vsub.s32 32, %v800_v55  ;;  %v805_v60 = vsub.s32 4294967266, %v800_v55 }
 0x195   : > { %v727_v12 = vsel %vm720_vm3, %v723_v47, %v726_v53  ;;  %v925_v39 = vand.u32 3, %v921_v51  ;;  %v990_v62 = vmul.u32 %v983_v57, %v974_v0  ;;  %v993_v43 = vadd.s32 1, %v2084_v32 }
 0x196   : > { %v728_v61 = vsel %vm718_vm1, nan, %v727_v12  ;;  %v802_v63 = vshll.u32 %v2043_v11, %v800_v55  ;;  %v803_v2 = vshrl.u32 %v785_v56, %v801_v59  ;;  %v806_v46 = vadd.s32 127, %v805_v60 }
 0x197   : > { %vm992_vm4 = vc.u32 %v2090_v54, %v2083_v50  ;;  %v1039_v42 = vmul.f32 %v2098_v48, %v728_v61  ;;  %vm930_vm5 = vcmp.eq.s32.totalorder %v925_v39, 2  ;;  %vm926_vm6 = vcmp.lt.s32.totalorder %v925_v39, 2 }
 0x198   : > { %v994_v5 = vsel %vm992_vm4, %v993_v43, %v2084_v32  ;;  %v1474_v1 = vpop.eup %1473  ;;  %v804_v21 = vor.u32 %v803_v2, %v802_v63  ;;  %v807_v38 = vshll.u32 %v806_v46, 23  ;;  %vm927_vm7 = vcmp.eq.s32.totalorder %v925_v39, 0 }
 0x199   : > { %v995_v14 = vadd.s32 %v994_v5, %v990_v62  ;;  %v1476_v30 = vpop.eup %1475  ;;  %v931_v51 = vxor.u32 2147483648, %v1474_v1  ;;  %1043 = vst [vmem:[%s2114_s29] sm:$0xff] %v1039_v42  ;;  %vm924_vm8 = vweird.f32 %v1830_v45  ;;  %vm731_vm9 = vcmp.lt.s32.totalorder %v1833_v3, 0 }
 0x19a   : > { %v928_v11 = vxor.u32 2147483648, %v1476_v30  ;;  %v808_v22 = vor.u32 4788187, %v807_v38  ;;  %v811_v18 = vcvt.s32.f32 %v804_v21  ;;  %vm730_vm10 = vcmp.le.f32.partialorder %v729_v6, 0.7853982 }
 0x19b   : > { %v996_v19 = vadd.s32 536870912, %v995_v14  ;;  %v932_v23 = vsel %vm930_vm5, %v931_v51, %v1476_v30  ;;  %v815_v28 = vsub.s32 4, %v2033_v40  ;;  %v991_v6 = vadd.s32 %v2083_v50, %v2090_v54 }
 0x19c   : > { %v929_v4 = vsel %vm927_vm7, %v1474_v1, %v928_v11  ;;  %v809_v16 = vand.u32 2147483647, %v808_v22  ;;  %vm821_vm15 = vweird.f32 %v1833_v3  ;;  %vm937_vm0 = vcmp.lt.s32.totalorder %v1922_v44, 0 }
 0x19d   : > { %v997_v24 = vshrl.u32 %v996_v19, 30  ;;  %v933_v37 = vsel %vm926_vm6, %v929_v4, %v932_v23  ;;  %v816_v9 = vsel %vm731_vm9, %v815_v28, %v2033_v40  ;;  %vm936_vm1 = vcmp.le.f32.partialorder %v935_v15, 0.7853982 }
 0x19e   : > { %v934_v20 = vsel %vm924_vm8, nan, %v933_v37  ;;  %v812_v27 = vmul.f32 %v811_v18, %v809_v16  ;;  %v818_v34 = vsel %vm730_vm10, 0, %v816_v9  ;;  %vm1027_vm5 = vweird.f32 %v1922_v44 }
 0x19f   : > { %v998_v41 = vshll.u32 %v997_v24, 30  ;;  %v1041_v10 = vmul.f32 %v2098_v48, %v934_v20  ;;  %v822_v58 = vand.u32 3, %v818_v34  ;;  %v1021_v63 = vsub.s32 4, %v997_v24 }
 0x1a0   : > { %v813_v13 = vxor.u32 2147483648, %v812_v27 }
 0x1a1   : > { %v999_v25 = vsub.s32 %v995_v14, %v998_v41  ;;  %1045 = vst [vmem:[%s2114_s29 + $0x10] sm:$0xff] %v1041_v10  ;;  %vm827_vm12 = vcmp.eq.s32.totalorder %v822_v58, 2  ;;  %vm824_vm13 = vcmp.eq.s32.totalorder %v822_v58, 0  ;;  %vm823_vm14 = vcmp.lt.s32.totalorder %v822_v58, 2 }
 0x1a2   : > { %v814_v26 = vsel %vm731_vm9, %v813_v13, %v812_v27 }
 0x1a3   : > { %v1001_v7 = vsub.s32 0, %v999_v25  ;;  %v817_v45 = vsel %vm730_vm10, %v1833_v3, %v814_v26  ;;  %v1022_v3 = vsel %vm937_vm0, %v1021_v63, %v997_v24 }
 0x1a4   : > { %1477 = vcosq.f32 %v817_v45  ;;  %v1024_v46 = vsel %vm936_vm1, 0, %v1022_v3 }
 0x1a5   : > { %v1222_v29 = vmin.u32 %v1001_v7, %v999_v25  ;;  %1479 = vsinq.f32 %v817_v45  ;;  %v1028_v5 = vand.u32 3, %v1024_v46 }
 0x1a7   : > { %v1003_v31 = vclz %v1222_v29  ;;  %vm1033_vm2 = vcmp.eq.s32.totalorder %v1028_v5, 2  ;;  %vm1030_vm3 = vcmp.eq.s32.totalorder %v1028_v5, 0  ;;  %vm1029_vm4 = vcmp.lt.s32.totalorder %v1028_v5, 2 }
 0x1a9   : > { %v1223_v33 = vadd.s32 4294967294, %v1003_v31 }
 0x1ab   : > { %vm1224_vm11 = vcmp.lt.s32.totalorder %v1223_v33, 0 }
 0x1ac   : > { %v1006_v57 = vsel %vm1224_vm11, 0, %v1223_v33 }
 0x1ad   : > { %v1007_v35 = vsub.s32 32, %v1006_v57  ;;  %v1011_v36 = vsub.s32 4294967266, %v1006_v57  ;;  %v1008_v17 = vshll.u32 %v999_v25, %v1006_v57 }
 0x1ae   : > { %v1478_v0 = vpop.eup %1477 }
 0x1af   : > { %v1009_v8 = vshrl.u32 %v991_v6, %v1007_v35  ;;  %v1012_v49 = vadd.s32 127, %v1011_v36  ;;  %v1480_v32 = vpop.eup %1479  ;;  %v828_v53 = vxor.u32 2147483648, %v1478_v0 }
 0x1b0   : > { %v825_v52 = vxor.u32 2147483648, %v1480_v32 }
 0x1b1   : > { %v1010_v40 = vor.u32 %v1009_v8, %v1008_v17  ;;  %v1013_v47 = vshll.u32 %v1012_v49, 23  ;;  %v829_v55 = vsel %vm827_vm12, %v828_v53, %v1480_v32 }
 0x1b2   : > { %v826_v12 = vsel %vm824_vm13, %v1478_v0, %v825_v52 }
 0x1b3   : > { %v1014_v56 = vor.u32 4788187, %v1013_v47  ;;  %v830_v50 = vsel %vm823_vm14, %v826_v12, %v829_v55  ;;  %v1017_v60 = vcvt.s32.f32 %v1010_v40 }
 0x1b4   : > { %v831_v54 = vsel %vm821_vm15, nan, %v830_v50 }
 0x1b5   : > { %v1015_v59 = vand.u32 2147483647, %v1014_v56  ;;  %v1040_v61 = vmul.f32 %v2098_v48, %v831_v54 }
 0x1b7   : > { %v1018_v39 = vmul.f32 %v1017_v60, %v1015_v59  ;;  %1044 = vst [vmem:[%s2114_s29 + $0x8] sm:$0xff] %v1040_v61 }
 0x1b9   : > { %v1019_v62 = vxor.u32 2147483648, %v1018_v39 }
 0x1bb   : > { %v1020_v43 = vsel %vm937_vm0, %v1019_v62, %v1018_v39 }
 0x1bc   : > { %v1023_v2 = vsel %vm936_vm1, %v1922_v44, %v1020_v43 }
 0x1bd   : > { %1481 = vcosq.f32 %v1023_v2 }
 0x1be   : > { %1483 = vsinq.f32 %v1023_v2 }
 0x1c7   : > { %v1482_v42 = vpop.eup %1481 }
 0x1c8   : > { %v1484_v1 = vpop.eup %1483  ;;  %v1034_v21 = vxor.u32 2147483648, %v1482_v42 }
 0x1c9   : > { %v1031_v38 = vxor.u32 2147483648, %v1484_v1 }
 0x1ca   : > { %v1035_v15 = vsel %vm1033_vm2, %v1034_v21, %v1484_v1 }
 0x1cb   : > { %v1032_v14 = vsel %vm1030_vm3, %v1482_v42, %v1031_v38 }
 0x1cc   : > { %v1036_v30 = vsel %vm1029_vm4, %v1032_v14, %v1035_v15 }
 0x1cd   : > { %v1037_v51 = vsel %vm1027_vm5, nan, %v1036_v30 }
 0x1ce   : > { %v1042_v11 = vmul.f32 %v2098_v48, %v1037_v51 }
 0x1d0   : > { %1046 = vst [vmem:[%s2114_s29 + $0x18] sm:$0xff] %v1042_v11 }
 0x1d1   : > { %1513 = shalt.err (!%p1510_p2)
}
 0x1d2   : > { %s1514_s13 = scalar_lea.hbm %s2142_s8, 512  ;;  %s1518_s22 = scalar_lea.hbm %s2191_s4, 1024 }
 0x1d3   : > { %p1515_p3 = scmp.ne.s32.totalorder %s2142_s8, %s1514_s13  ;;  %p1519_p8 = scmp.lt.u32.totalorder %s2142_s8, %s2191_s4 }
 0x1d4   : > { %p1520_p11 = scmp.lt.u32.totalorder %s1518_s22, %s1514_s13  ;;  %p1522_p10 = scmp.lt.u32.totalorder %s1514_s13, %s2142_s8 }
 0x1d5   : > { %p1516_p4 = pnand %p1515_p3, %p1640_p5 }
 0x1d6   : > { %p1521_p9 = por %p1520_p11, %p1519_p8 }
 0x1d7   : > { %p1517_p7 = pneg %p1516_p4 }
 0x1d8   : > { %p1523_p12 = por %p1522_p10, %p1521_p9 }
 0x1da   : > { %p1524_p13 = pnand %p1523_p12, %p1517_p7 }
 0x1dc   : > { %1527 = shalt.err (!%p1524_p13)
}
 0x1dd   : > { %1415 = dma.vmem_to_hbm [thread:$0]  (%p1640_p5), %s2144_s5, 512, %s2142_s8, %s1048_s19  }
 0x1de PF: > { %p1427_p0 = scmp.ge.s32.totalorder %s1566_s18, 2  ;;  %s1074_s28 = sand.u32 1, %s1554_s15  }
 0x1df   : > { %s1075_s29 = scalar_lea.sflag [#allocation3], %s1074_s28 }
 0x1e0   : > { %p1422_p1 = pnand %p1427_p0, %p1644_p6 }
 0x1e2   : > { %1549 = dma.done.wait (!%p1422_p1), %s1075_s29, 512  }
 0x1e3   : > { %1551 = vsyncadd (!%p1422_p1), %s1075_s29, 4294966784  ;;  %p15_p2 = scmp.ge.s32.totalorder %s1627_s21, 4   ;;  %s2201_s15 = smov %s1558_s16 }
 0x1e4   : > { %s2202_s16 = smov %s1562_s17  ;;  %s2203_s17 = smov %s1638_s24 }
 0x1e5   : > { %s2204_s18 = smov %s1627_s21  ;;  %17 = sbr.rel (!%p15_p2) target bundleno = 4 (0x4), region = 76 }
 0x1ec   :  { %1080 = vsyncpa [#allocation3], 1 }
 0x1ed   :  { %1082 = vsyncpa [#allocation3 + $0x1], 1 }
 0x1ee   :  { %1083 = vsyncpa [#allocation4], 1 }
 0x1ef   :  { %1085 = vsyncpa [#allocation4 + $0x1], 1 }

</bundles_post_ra>
